<compile_context>
chip_gen: v6e
topology: v6e:2x2x1
jax: 0.10.0
libtpu: 0.0.40
codegen_flags: <defaults>
</compile_context>

<pallas_src>
import functools

import jax
import jax.numpy as jnp
from jax.experimental import pallas as pl
from jax.experimental.pallas import tpu as pltpu


def _cdiv(a, b):
    return -(-a // b)


def _round_down(x, m):
    return (x // m) * m


def _choose_tile_rows(n_rows, bytes_per_row, cap_bytes=8 << 20, max_rows=1024):
    """Biggest row tile (multiple of 8) whose per-step input traffic fits cap_bytes."""
    t = min(max(cap_bytes // max(bytes_per_row, 1), 8), max_rows)
    t = max(_round_down(t, 8), 8)
    if t > n_rows:
        t = _round_down(n_rows, 8) if n_rows >= 8 else n_rows
    return max(t, 1)


def _bce_with_logits(x, y):
    # Numerically-stable BCEWithLogits (torch.nn.BCEWithLogitsLoss, weight=None):
    #   loss = max(x, 0) - x*y + log(1 + exp(-|x|))
    return jnp.maximum(x, 0.0) - x * y + jnp.log1p(jnp.exp(-jnp.abs(x)))


def _bce_kernel(t_ref, p_ref, out_loss_ref, out_y_ref, loss_acc, y_acc, *,
                index_targets, label_smoothing, num_classes, n_rows, tile_m,
                steps_per_core):
    c = pl.program_id(0)          # core-split axis ("parallel")
    j = pl.program_id(1)          # reduction axis ("arbitrary")

    @pl.when(j == 0)
    def _init():
        loss_acc[...] = jnp.zeros_like(loss_acc)
        y_acc[...] = jnp.zeros_like(y_acc)

    x = p_ref[...].astype(jnp.float32)                    # (tile_m, lanes)
    lanes = x.shape[-1]

    if index_targets:
        # scatter_(1, targets, 1) -> one-hot via lane class ids
        cls = jax.lax.broadcasted_iota(jnp.int32, x.shape, 1)
        y = (cls == t_ref[...]).astype(jnp.float32)
    else:
        y = t_ref[...].astype(jnp.float32)
    y = y * (1.0 - label_smoothing) + label_smoothing / num_classes

    loss = _bce_with_logits(x, y)

    # Mask tail / fully-out-of-range (clamped) tiles.
    row0 = (c * steps_per_core + j) * tile_m
    rid = row0 + jax.lax.broadcasted_iota(jnp.int32, (tile_m, 1), 0)
    valid = rid < n_rows
    loss = jnp.where(valid, loss, 0.0)
    y = jnp.where(valid, y, 0.0)

    # Pure-VPU accumulation: fold the tile into an (8, lanes) accumulator with
    # aligned static slices + adds (no per-step cross-lane/cross-sublane reduce).
    if tile_m % 8 == 0:
        part_l = loss[0:8]
        part_y = y[0:8]
        for k in range(1, tile_m // 8):
            part_l = part_l + loss[k * 8:(k + 1) * 8]
            part_y = part_y + y[k * 8:(k + 1) * 8]
        loss_acc[...] += part_l
        y_acc[...] += part_y
    else:
        # tiny problems only (tile_m == n_rows < 8): accumulator is tile-shaped
        loss_acc[...] += loss
        y_acc[...] += y

    # Write the per-core partial accumulators exactly once.
    @pl.when(j == pl.num_programs(1) - 1)
    def _finalize():
        out_loss_ref[0] = loss_acc[...]
        out_y_ref[0] = y_acc[...]


def bce_loss(pred, targets, *, reduction="mean", label_smoothing=0.0, num_cores=2):
    """Pallas implementation of the BCE module's forward pass (scalar output).

    reduction='mean'  -> mean(loss)
    reduction='sum'   -> sum(loss) / sum(smoothed targets)   (matches the reference module)
    """
    # TODO(synk): reduction='none' (per-element loss tensor) and the optional `weight`
    # tensor of BCEWithLogitsLoss are not implemented.
    assert reduction in ("mean", "sum"), "only scalar-reducing modes implemented"
    N, C = pred.shape
    total = float(N * C)
    index_targets = targets.shape != pred.shape

    if index_targets:
        p_in = pred.astype(jnp.float32)
        t_in = targets.reshape(N, 1).astype(jnp.int32)
        n_rows, lanes = N, C
        bytes_per_row = lanes * 4 + 4
    else:
        # Lane-dense: flatten to 128-wide rows when possible (free reshape, no padding copy).
        if (N * C) % 128 == 0:
            n_rows, lanes = (N * C) // 128, 128
        else:
            n_rows, lanes = N, C
        p_in = pred.astype(jnp.float32).reshape(n_rows, lanes)
        t_in = targets.astype(jnp.float32).reshape(n_rows, lanes)
        bytes_per_row = lanes * 8

    tile_m = _choose_tile_rows(n_rows, bytes_per_row)
    acc_rows = 8 if tile_m % 8 == 0 else tile_m
    total_steps = _cdiv(n_rows, tile_m)
    steps_per_core = _cdiv(total_steps, num_cores)
    max_block = total_steps - 1

    def in_idx(c, j):
        # Clamp fully out-of-range blocks (they are masked to zero in the kernel).
        return (jnp.minimum(c * steps_per_core + j, max_block), 0)

    def out_idx(c, j):
        return (c, 0, 0)

    kernel = functools.partial(
        _bce_kernel,
        index_targets=index_targets,
        label_smoothing=float(label_smoothing),
        num_classes=C,
        n_rows=n_rows,
        tile_m=tile_m,
        steps_per_core=steps_per_core,
    )

    t_block = (tile_m, 1) if index_targets else (tile_m, lanes)

    out_loss, out_y = pl.pallas_call(
        kernel,
        out_shape=(
            jax.ShapeDtypeStruct((num_cores, acc_rows, lanes), jnp.float32),
            jax.ShapeDtypeStruct((num_cores, acc_rows, lanes), jnp.float32),
        ),
        grid_spec=pltpu.PrefetchScalarGridSpec(
            num_scalar_prefetch=0,
            grid=(num_cores, steps_per_core),
            in_specs=[
                pl.BlockSpec(t_block, in_idx),
                pl.BlockSpec((tile_m, lanes), in_idx),
            ],
            out_specs=(
                pl.BlockSpec((1, acc_rows, lanes), out_idx),
                pl.BlockSpec((1, acc_rows, lanes), out_idx),
            ),
            scratch_shapes=[
                pltpu.VMEM((acc_rows, lanes), jnp.float32),
                pltpu.VMEM((acc_rows, lanes), jnp.float32),
            ],
        ),
        compiler_params=pltpu.CompilerParams(
            dimension_semantics=("parallel", "arbitrary"),
            vmem_limit_bytes=32 * 1024 * 1024,
        ),
    )(t_in, p_in)

    # Tiny final reduce of the per-core partial accumulators (plain XLA).
    loss_sum = jnp.sum(out_loss)
    if reduction == "mean":
        return loss_sum / total
    return loss_sum / jnp.sum(out_y)


def _reference(pred, targets, reduction="mean", label_smoothing=0.0):
    N, C = pred.shape
    if targets.shape != pred.shape:
        y = jax.nn.one_hot(targets, C, dtype=jnp.float32)
    else:
        y = targets.astype(jnp.float32)
    y = y * (1.0 - label_smoothing) + label_smoothing / C
    loss = jnp.maximum(pred, 0.0) - pred * y + jnp.log1p(jnp.exp(-jnp.abs(pred)))
    if reduction == "mean":
        return loss.mean()
    return loss.sum() / y.sum()


if __name__ == "__main__":
    key = jax.random.PRNGKey(0)
    k1, k2, k3, k4, k5 = jax.random.split(key, 5)

    # Small shapes consistent with the module (pred (N, C) logits).
    N, C = 16, 32
    pred = jax.random.normal(k1, (N, C), dtype=jnp.float32)
    targets_idx = jax.random.randint(k2, (N,), 0, C, dtype=jnp.int32)
    targets_soft = jax.random.uniform(k3, (N, C), dtype=jnp.float32)

    # Index-target path (one-hot scatter + label smoothing), reduction='mean'
    out_mean = bce_loss(pred, targets_idx, reduction="mean", label_smoothing=0.1)
    jax.block_until_ready(out_mean)
    ref_mean = _reference(pred, targets_idx, "mean", 0.1)
    assert jnp.allclose(out_mean, ref_mean, atol=1e-5, rtol=1e-5), (out_mean, ref_mean)

    # Same-shape soft-target path (lane-dense flattened), reduction='sum'
    out_sum = bce_loss(pred, targets_soft, reduction="sum", label_smoothing=0.0)
    jax.block_until_ready(out_sum)
    ref_sum = _reference(pred, targets_soft, "sum", 0.0)
    assert jnp.allclose(out_sum, ref_sum, atol=1e-5, rtol=1e-5), (out_sum, ref_sum)

    # Non-divisible shapes to exercise the tail mask + 2-way core split.
    N2, C2 = 20, 24
    pred2 = jax.random.normal(k4, (N2, C2), dtype=jnp.float32)
    targets_idx2 = jax.random.randint(k5, (N2,), 0, C2, dtype=jnp.int32)
    out2 = bce_loss(pred2, targets_idx2, reduction="sum", label_smoothing=0.05)
    jax.block_until_ready(out2)
    ref2 = _reference(pred2, targets_idx2, "sum", 0.05)
    assert jnp.allclose(out2, ref2, atol=1e-5, rtol=1e-5), (out2, ref2)

    print("KERNEL_OK")
</pallas_src>

<mosaic_0001>
module attributes {stable_mosaic.version = 11 : i64} {
  func.func @_bce_kernel(%arg0: i32, %arg1: i32, %arg2: memref<16x1xi32, #tpu.memory_space<vmem>>, %arg3: memref<16x32xf32, #tpu.memory_space<vmem>>, %arg4: memref<1x8x32xf32, #tpu.memory_space<vmem>>, %arg5: memref<1x8x32xf32, #tpu.memory_space<vmem>>, %arg6: memref<8x32xf32, #tpu.memory_space<vmem>>, %arg7: memref<8x32xf32, #tpu.memory_space<vmem>>) attributes {dimension_semantics = [#tpu.dimension_semantics<parallel>, #tpu.dimension_semantics<arbitrary>], iteration_bounds = array<i64: 2, 1>, scalar_prefetch = 0 : i64, scratch_operands = 2 : i64, tpu.core_type = #tpu.core_type<tc>, window_params = [{transform_indices = @transform_0, window_bounds = array<i64: 16, 1>}, {transform_indices = @transform_1, window_bounds = array<i64: 16, 32>}, {transform_indices = @transform_2, window_bounds = array<i64: 1, 8, 32>}, {transform_indices = @transform_3, window_bounds = array<i64: 1, 8, 32>}]} {
    %c0_i32 = arith.constant 0 : i32
    %0 = arith.cmpi eq, %arg1, %c0_i32 : i32
    %1 = arith.extui %0 : i1 to i32
    %c0_i32_0 = arith.constant 0 : i32
    %2 = arith.cmpi ne, %1, %c0_i32_0 : i32
    scf.if %2 {
      %cst_20 = arith.constant 0.000000e+00 : f32
      %55 = vector.broadcast %cst_20 : f32 to vector<8x32xf32>
      %c0_21 = arith.constant 0 : index
      %c0_22 = arith.constant 0 : index
      %56 = vector.load %arg6[%c0_21, %c0_22] : memref<8x32xf32, #tpu.memory_space<vmem>>, vector<8x32xf32>
      tpu.vector_store %arg6[%c0_21, %c0_22], %55 {strides = array<i32>} : memref<8x32xf32, #tpu.memory_space<vmem>>, vector<8x32xf32>,
      %cst_23 = arith.constant 0.000000e+00 : f32
      %57 = vector.broadcast %cst_23 : f32 to vector<8x32xf32>
      %c0_24 = arith.constant 0 : index
      %c0_25 = arith.constant 0 : index
      %58 = vector.load %arg7[%c0_24, %c0_25] : memref<8x32xf32, #tpu.memory_space<vmem>>, vector<8x32xf32>
      tpu.vector_store %arg7[%c0_24, %c0_25], %57 {strides = array<i32>} : memref<8x32xf32, #tpu.memory_space<vmem>>, vector<8x32xf32>,
    } else {
    }
    %c0 = arith.constant 0 : index
    %c0_1 = arith.constant 0 : index
    %3 = vector.load %arg3[%c0, %c0_1] : memref<16x32xf32, #tpu.memory_space<vmem>>, vector<16x32xf32>
    %4 = tpu.iota {dimensions = array<i32: 1>} : vector<16x32xi32>
    %c0_2 = arith.constant 0 : index
    %c0_3 = arith.constant 0 : index
    %5 = vector.load %arg2[%c0_2, %c0_3] : memref<16x1xi32, #tpu.memory_space<vmem>>, vector<16x1xi32>
    %6 = vector.broadcast %5 : vector<16x1xi32> to vector<16x32xi32>
    %7 = arith.cmpi eq, %4, %6 : vector<16x32xi32>
    %8 = arith.extui %7 : vector<16x32xi1> to vector<16x32xi32>
    %9 = arith.sitofp %8 : vector<16x32xi32> to vector<16x32xf32>
    %cst = arith.constant 0.899999976 : f32
    %10 = vector.broadcast %cst : f32 to vector<16x32xf32>
    %11 = arith.mulf %9, %10 : vector<16x32xf32>
    %cst_4 = arith.constant 3.125000e-03 : f32
    %12 = vector.broadcast %cst_4 : f32 to vector<16x32xf32>
    %13 = arith.addf %11, %12 : vector<16x32xf32>
    %cst_5 = arith.constant 0.000000e+00 : f32
    %14 = vector.broadcast %cst_5 : f32 to vector<16x32xf32>
    %15 = arith.maximumf %3, %14 : vector<16x32xf32>
    %16 = arith.mulf %3, %13 : vector<16x32xf32>
    %17 = arith.subf %15, %16 : vector<16x32xf32>
    %18 = math.absf %3 : vector<16x32xf32>
    %cst_6 = arith.constant 0.000000e+00 : f32
    %19 = vector.broadcast %cst_6 : f32 to vector<16x32xf32>
    %20 = arith.subf %19, %18 : vector<16x32xf32>
    %21 = math.exp %20 : vector<16x32xf32>
    %22 = math.log1p %21 : vector<16x32xf32>
    %23 = arith.addf %17, %22 : vector<16x32xf32>
    %c1_i32 = arith.constant 1 : i32
    %24 = arith.muli %arg0, %c1_i32 : i32
    %25 = arith.addi %24, %arg1 : i32
    %c16_i32 = arith.constant 16 : i32
    %26 = arith.muli %25, %c16_i32 : i32
    %27 = tpu.iota {dimensions = array<i32: 0>} : vector<16x1xi32>
    %28 = vector.broadcast %26 : i32 to vector<16x1xi32>
    %29 = arith.addi %28, %27 : vector<16x1xi32>
    %c16_i32_7 = arith.constant 16 : i32
    %30 = vector.broadcast %c16_i32_7 : i32 to vector<16x1xi32>
    %31 = arith.cmpi slt, %29, %30 : vector<16x1xi32>
    %cst_8 = arith.constant 0.000000e+00 : f32
    %32 = vector.shape_cast %31 : vector<16x1xi1> to vector<16x1xi1>
    %33 = vector.broadcast %32 : vector<16x1xi1> to vector<16x32xi1>
    %34 = vector.broadcast %cst_8 : f32 to vector<16x32xf32>
    %35 = arith.select %33, %23, %34 : vector<16x32xi1>, vector<16x32xf32>
    %cst_9 = arith.constant 0.000000e+00 : f32
    %36 = vector.shape_cast %31 : vector<16x1xi1> to vector<16x1xi1>
    %37 = vector.broadcast %36 : vector<16x1xi1> to vector<16x32xi1>
    %38 = vector.broadcast %cst_9 : f32 to vector<16x32xf32>
    %39 = arith.select %37, %13, %38 : vector<16x32xi1>, vector<16x32xf32>
    %40 = vector.extract_strided_slice %35 {offsets = [0, 0], sizes = [8, 32], strides = [1, 1]} : vector<16x32xf32> to vector<8x32xf32>
    %41 = vector.extract_strided_slice %39 {offsets = [0, 0], sizes = [8, 32], strides = [1, 1]} : vector<16x32xf32> to vector<8x32xf32>
    %42 = vector.extract_strided_slice %35 {offsets = [8, 0], sizes = [8, 32], strides = [1, 1]} : vector<16x32xf32> to vector<8x32xf32>
    %43 = arith.addf %40, %42 : vector<8x32xf32>
    %44 = vector.extract_strided_slice %39 {offsets = [8, 0], sizes = [8, 32], strides = [1, 1]} : vector<16x32xf32> to vector<8x32xf32>
    %45 = arith.addf %41, %44 : vector<8x32xf32>
    %c0_10 = arith.constant 0 : index
    %c0_11 = arith.constant 0 : index
    %46 = vector.load %arg6[%c0_10, %c0_11] : memref<8x32xf32, #tpu.memory_space<vmem>>, vector<8x32xf32>
    %47 = arith.addf %46, %43 : vector<8x32xf32>
    %c0_12 = arith.constant 0 : index
    %c0_13 = arith.constant 0 : index
    %48 = vector.load %arg6[%c0_12, %c0_13] : memref<8x32xf32, #tpu.memory_space<vmem>>, vector<8x32xf32>
    tpu.vector_store %arg6[%c0_12, %c0_13], %47 {strides = array<i32>} : memref<8x32xf32, #tpu.memory_space<vmem>>, vector<8x32xf32>,
    %c0_14 = arith.constant 0 : index
    %c0_15 = arith.constant 0 : index
    %49 = vector.load %arg7[%c0_14, %c0_15] : memref<8x32xf32, #tpu.memory_space<vmem>>, vector<8x32xf32>
    %50 = arith.addf %49, %45 : vector<8x32xf32>
    %c0_16 = arith.constant 0 : index
    %c0_17 = arith.constant 0 : index
    %51 = vector.load %arg7[%c0_16, %c0_17] : memref<8x32xf32, #tpu.memory_space<vmem>>, vector<8x32xf32>
    tpu.vector_store %arg7[%c0_16, %c0_17], %50 {strides = array<i32>} : memref<8x32xf32, #tpu.memory_space<vmem>>, vector<8x32xf32>,
    %c0_i32_18 = arith.constant 0 : i32
    %52 = arith.cmpi eq, %arg1, %c0_i32_18 : i32
    %53 = arith.extui %52 : i1 to i32
    %c0_i32_19 = arith.constant 0 : i32
    %54 = arith.cmpi ne, %53, %c0_i32_19 : i32
    scf.if %54 {
      %c0_20 = arith.constant 0 : index
      %c0_21 = arith.constant 0 : index
      %55 = vector.load %arg6[%c0_20, %c0_21] : memref<8x32xf32, #tpu.memory_space<vmem>>, vector<8x32xf32>
      %c0_22 = arith.constant 0 : index
      %c0_23 = arith.constant 0 : index
      %c0_24 = arith.constant 0 : index
      %56 = vector.load %arg4[%c0_22, %c0_23, %c0_24] : memref<1x8x32xf32, #tpu.memory_space<vmem>>, vector<1x8x32xf32>
      %57 = vector.shape_cast %56 : vector<1x8x32xf32> to vector<8x32xf32>
      %58 = vector.shape_cast %55 : vector<8x32xf32> to vector<1x8x32xf32>
      tpu.vector_store %arg4[%c0_22, %c0_23, %c0_24], %58 {strides = array<i32>} : memref<1x8x32xf32, #tpu.memory_space<vmem>>, vector<1x8x32xf32>,
      %c0_25 = arith.constant 0 : index
      %c0_26 = arith.constant 0 : index
      %59 = vector.load %arg7[%c0_25, %c0_26] : memref<8x32xf32, #tpu.memory_space<vmem>>, vector<8x32xf32>
      %c0_27 = arith.constant 0 : index
      %c0_28 = arith.constant 0 : index
      %c0_29 = arith.constant 0 : index
      %60 = vector.load %arg5[%c0_27, %c0_28, %c0_29] : memref<1x8x32xf32, #tpu.memory_space<vmem>>, vector<1x8x32xf32>
      %61 = vector.shape_cast %60 : vector<1x8x32xf32> to vector<8x32xf32>
      %62 = vector.shape_cast %59 : vector<8x32xf32> to vector<1x8x32xf32>
      tpu.vector_store %arg5[%c0_27, %c0_28, %c0_29], %62 {strides = array<i32>} : memref<1x8x32xf32, #tpu.memory_space<vmem>>, vector<1x8x32xf32>,
    } else {
    }
    return
  }
  func.func @transform_0(%arg0: i32, %arg1: i32) -> (i32, i32) {
    %c1_i32 = arith.constant 1 : i32
    %0 = arith.muli %arg0, %c1_i32 : i32
    %1 = arith.addi %0, %arg1 : i32
    %c0_i32 = arith.constant 0 : i32
    %2 = arith.minsi %1, %c0_i32 : i32
    %c0_i32_0 = arith.constant 0 : i32
    %c0_i32_1 = arith.constant 0 : i32
    return %2, %c0_i32_0 : i32, i32
  }
  func.func @transform_1(%arg0: i32, %arg1: i32) -> (i32, i32) {
    %c1_i32 = arith.constant 1 : i32
    %0 = arith.muli %arg0, %c1_i32 : i32
    %1 = arith.addi %0, %arg1 : i32
    %c0_i32 = arith.constant 0 : i32
    %2 = arith.minsi %1, %c0_i32 : i32
    %c0_i32_0 = arith.constant 0 : i32
    %c0_i32_1 = arith.constant 0 : i32
    return %2, %c0_i32_0 : i32, i32
  }
  func.func @transform_2(%arg0: i32, %arg1: i32) -> (i32, i32, i32) {
    %c0_i32 = arith.constant 0 : i32
    %c0_i32_0 = arith.constant 0 : i32
    %c0_i32_1 = arith.constant 0 : i32
    return %arg0, %c0_i32, %c0_i32_0 : i32, i32, i32
  }
  func.func @transform_3(%arg0: i32, %arg1: i32) -> (i32, i32, i32) {
    %c0_i32 = arith.constant 0 : i32
    %c0_i32_0 = arith.constant 0 : i32
    %c0_i32_1 = arith.constant 0 : i32
    return %arg0, %c0_i32, %c0_i32_0 : i32, i32, i32
  }
}

</mosaic_0001>

<bundles_post_ra>
// kernel: tpu_custom_call.1
= control target key start
LH: loop header
LB: loop body
LE: loop exit
PB: predicated region body
PF: predicated region fallthrough
CT: control target
= control target key end

     0   :  { %9 = vsyncpa [#allocation5], 0  ;;  %s891_s0 = inlined_call_operand.vmem [shape: s32[16,1], index: 0, kind: input, shape index: {}]   ;;  %s892_s1 = inlined_call_operand.vmem [shape: f32[16,32], index: 1, kind: input, shape index: {}]   ;;  %s893_s2 = inlined_call_operand.hbm [shape: f32[2,8,32], index: 2, kind: output, shape index: {0}]   ;;  %s894_s3 = inlined_call_operand.hbm [shape: f32[2,8,32], index: 3, kind: output, shape index: {1}]  }
   0x1   :  { %11 = vsyncpa [#allocation5 + $0x1], 0 }
   0x2   :  { %12 = vsyncpa [#allocation7], 0 }
   0x3   :  { %14 = vsyncpa [#allocation7 + $0x1], 0  ;;  %s721_s12 = smov 0   ;;  %s723_s13 = smov 0  }
   0x4   :  { %s725_s14 = smov 0   ;;  %s727_s15 = smov 0  }
   0x5   :  { %s729_s16 = smov 0   ;;  %s731_s17 = smov 0  }
   0x6 LB: > { %s498_s18 = sadd.s32 4294967295, %s695_s17   ;;  %s499_s19 = sadd.s32 4294967294, %s695_s17   ;;  %s695_s17 = sphi %s731_s17, %s20_s17   ;;  %s691_s16 = sphi %s729_s16, %s903_s16   ;;  %s687_s15 = sphi %s727_s15, %s902_s15   ;;  %s683_s14 = sphi %s725_s14, %s901_s14   ;;  %s679_s13 = sphi %s723_s13, %s900_s13   ;;  %s675_s12 = sphi %s721_s12, %s899_s12  }
   0x7   : > { %s32_s20 = sadd.s32 1, %s691_s16  ;;  %s103_s21 = sadd.s32 1, %s683_s14 }
   0x8   : > { %p34_p0 = scmp.ge.s32.totalorder %s32_s20, 2  ;;  %p113_p1 = scmp.ne.s32.totalorder %s683_s14, %s679_s13 }
   0x9   : > { %p114_p2 = scmp.eq.s32.totalorder %s498_s18, 1  ;;  %p119_p3 = scmp.ne.s32.totalorder %s679_s13, %s675_s12 }
   0xa   : > { %s905_s20 = smov (%p34_p0, %s32_s20), 0  ;;  %p120_p5 = scmp.eq.s32.totalorder %s499_s19, 1 }
   0xb   : > { %p761_p4 = por %p114_p2, %p113_p1  ;;  %s100_s23 = ssub.s32 %s691_s16, %s905_s20 }
   0xc   : > { %p502_p6 = scmp.ge.s32.totalorder %s695_s17, 1  ;;  %p101_p7 = scmp.eq.s32.totalorder %s100_s23, 0 }
   0xd   : > { %p768_p8 = por %p120_p5, %p119_p3  ;;  %p194_p9 = scmp.lt.s32.totalorder %s695_s17, 3 }
   0xe   : > { %s774_s25 = scalar_select %p101_p7, %s683_s14, %s103_s21  }
   0xf   : > { %p195_p10 = pnand %p502_p6, %p194_p9 }
  0x10   : > { %p235_p11 = scmp.lt.s32.totalorder (!%p195_p10), %s687_s15, 0  ;;  %s511_s8 = sshll.u32 (!%p195_p10), %s687_s15, 4 }
  0x11   : > { %198 = sbr.rel (%p195_p10) target bundleno = 213 (0xd5), region = 28  ;;  %s801_s9 = sand.u32 (!%p195_p10), 1, %s679_s13  }
  0x12   : > { %s503_s10 = sshll.u32 (!%p195_p10), %s801_s9, 3  ;;  %s514_s11 = sshll.u32 (!%p195_p10), %s687_s15, 7 }
  0x13   : > { %s233_s18 = scalar_lea.vmem (!%p195_p10), [#allocation6], %s503_s10  ;;  %s361_s29 = scalar_lea.sflag (!%p195_p10), [#allocation7], %s801_s9 }
  0x14   : > { %s387_s19 = sshll.u32 (!%p195_p10), %s233_s18, 4  ;;  %s816_s19 = int_to_ptr.vmem [resolvable:$true] %s387_s19 }
  0x15   : > { %s589_s30 = scalar_lea.vmem (!%p195_p10), %s816_s19, 128 }
  0x16   : > { %vm262_vm0 = vcmask 261120   ;;  %v697_v0 = vmov 0   ;;  %v698_v1 = vmov 0.0   ;;  %s236_s26 = scalar_select %p235_p11, %s687_s15, 0  ;;  %v267_v16 = vlaneseq }
  0x17   : > { %580 = vset.pattern.permute.xlu0 %v697_v0  ;;  %263 = vst.msk [vmem:[#allocation2] sm:$0xff] %vm262_vm0, %v698_v1  ;;  %264 = vst.msk [vmem:[#allocation3] sm:$0xff] %vm262_vm0, %v698_v1  ;;  %v326_v23 = vstv %s511_s8  ;;  %p590_p13 = scmp.ne.s32.totalorder %s816_s19, %s589_s30 }
  0x18   : > { %s505_s27 = sshll.u32 %s236_s26, 1  ;;  %v268_v17 = vand.u32 127, %v267_v16  ;;  %v324_v19 = vshrl.u32 %v267_v16, 7  ;;  %s814_s26 = scalar_lea.hbm %s894_s3, %s514_s11 }
  0x19   : > { %p238_p12 = scmp.lt.s32.totalorder %s505_s27, 1  ;;  %p591_p0 = pnand %p590_p13, %p761_p4 }
  0x1a   : > { %v325_v22 = vadd.s32 8, %v324_v19  ;;  %v327_v29 = vadd.s32 %v326_v23, %v324_v19 }
  0x1b   : > { %s907_s27 = smov (!%p238_p12, %s505_s27), 1  ;;  %p592_p1 = pneg %p591_p0 }
  0x1c   : > { %s506_s28 = sshll.u32 %s907_s27, 3  ;;  %v328_v31 = vadd.s32 %v326_v23, %v325_v22  ;;  %vm329_vm4 = vcmp.lt.s32.totalorder %v327_v29, 16  ;;  %s818_s27 = scalar_lea.vmem [#allocation4], %s503_s10 }
  0x1d   : > { %s241_s4 = scalar_lea.vmem %s891_s0, %s506_s28  ;;  %s253_s7 = scalar_lea.vmem %s892_s1, %s506_s28 }
  0x1e   : > { %v269_v2 = vld [vmem:[%s241_s4] sm:$0xff]  ;;  %v270_v3 = vld [vmem:[%s241_s4 + $0x8] sm:$0xff]  ;;  %vm330_vm5 = vcmp.lt.s32.totalorder %v328_v31, 16  ;;  %v345_v50 = vld [vmem:[#allocation3] sm:$0xff]  ;;  %s374_s28 = sshll.u32 %s818_s27, 4  ;;  %s699_s4 = smov [#allocation6]   ;;  %s375_s28 = int_to_ptr.vmem [resolvable:$true] %s374_s28 }
  0x1f   : > { %272 = vperm.xlu0 %580, %v269_v2   ;;  %v265_v4 = vld [vmem:[%s253_s7] sm:$0xff]  ;;  %v786_v5 = vld [vmem:[%s253_s7 + $0x8] sm:$0xff]  ;;  %v341_v60 = vld [vmem:[#allocation2] sm:$0xff]  ;;  %s593_s5 = sshll.u32 %s699_s4, 4  ;;  %s594_s5 = int_to_ptr.vmem [resolvable:$false] %s593_s5 }
  0x20   : > { %v293_v6 = vand.u32 2147483647, %v265_v4  ;;  %v294_v7 = vand.u32 2147483647, %v786_v5  ;;  %v287_v34 = vmax.f32 %v265_v4, 0.0  ;;  %v288_v45 = vmax.f32 %v786_v5, 0.0  ;;  %p596_p2 = scmp.lt.s32.totalorder %s816_s19, %s594_s5 }
  0x21   : > { %s595_s6 = scalar_lea.vmem %s594_s5, 256 }
  0x22   : > { %v295_v8 = vsub.f32 0.0, %v293_v6  ;;  %v296_v9 = vsub.f32 0.0, %v294_v7  ;;  %p597_p3 = scmp.lt.s32.totalorder %s595_s6, %s589_s30 }
  0x23   : > { %275 = vperm.xlu0 %580, %v270_v3  }
  0x24   : > { %v297_v10 = vmul.f32 1.442695, %v295_v8  ;;  %v299_v11 = vmul.f32 1.442695, %v296_v9  ;;  %p598_p5 = por %p597_p3, %p596_p2 }
  0x26   : > { %581 = vpow2.f32 %v297_v10  ;;  %p599_p6 = pnand %p598_p5, %p592_p1 }
  0x27   : > { %583 = vpow2.f32 %v299_v11 }
  0x33   : > { %v582_v12 = vpop.eup %581 }
  0x34   : > { %v584_v13 = vpop.eup %583  ;;  %v301_v14 = vadd.f32 1.0, %v582_v12  ;;  %v304_v18 = vmul.f32 -0.5, %v582_v12  ;;  %v307_v27 = vand.u32 2147483647, %v582_v12 }
  0x35   : > { %v310_v15 = vadd.f32 1.0, %v584_v13  ;;  %v313_v21 = vmul.f32 -0.5, %v584_v13  ;;  %v316_v36 = vand.u32 2147483647, %v584_v13 }
  0x36   : > { %585 = vlog2.f32 %v301_v14  ;;  %v305_v24 = vadd.f32 1.0, %v304_v18  ;;  %vm790_vm3 = vcmp.lt.f32.partialorder %v307_v27, 0.0004427343 }
  0x37   : > { %587 = vlog2.f32 %v310_v15  ;;  %v314_v30 = vadd.f32 1.0, %v313_v21  ;;  %vm317_vm6 = vcmp.lt.f32.partialorder %v316_v36, 0.0004427343 }
  0x38   : > { %v306_v38 = vmul.f32 %v582_v12, %v305_v24 }
  0x39   : > { %v315_v44 = vmul.f32 %v584_v13, %v314_v30 }
  0x43   : > { %v586_v26 = vpop.eup %585 }
  0x44   : > { %v588_v33 = vpop.eup %587  ;;  %v303_v37 = vmul.f32 0.6931472, %v586_v26 }
  0x45   : > { %v312_v43 = vmul.f32 0.6931472, %v588_v33 }
  0x46   : > { %v309_v48 = vsel %vm790_vm3, %v306_v38, %v303_v37 }
  0x47   : > { %v318_v53 = vsel %vm317_vm6, %v315_v44, %v312_v43 }
  0x9a   : > { %v273_v20 = vpop.permute.xlu0 %272 }
  0x9b   : > { %vm277_vm1 = vcmp.eq.s32.totalorder %v268_v17, %v273_v20 }
  0x9c   : > { %v509_v25 = vsel %vm277_vm1, 1.0, %v698_v1 }
  0x9d   : > { %v283_v28 = vmul.f32 0.9, %v509_v25 }
  0x9e   : > { %v276_v32 = vpop.permute.xlu0 %275 }
  0x9f   : > { %v285_v35 = vadd.f32 0.003125, %v283_v28  ;;  %vm278_vm2 = vcmp.eq.s32.totalorder %v268_v17, %v276_v32 }
  0xa0   : > { %v510_v39 = vsel %vm278_vm2, 1.0, %v698_v1 }
  0xa1   : > { %v289_v41 = vmul.f32 %v285_v35, %v265_v4  ;;  %v284_v42 = vmul.f32 0.9, %v510_v39  ;;  %v337_v49 = vsel %vm329_vm4, %v285_v35, 0.0 }
  0xa3   : > { %v291_v46 = vsub.f32 %v287_v34, %v289_v41  ;;  %v286_v47 = vadd.f32 0.003125, %v284_v42 }
  0xa5   : > { %v290_v51 = vmul.f32 %v286_v47, %v786_v5  ;;  %v338_v52 = vsel %vm330_vm5, %v286_v47, 0.0  ;;  %v319_v55 = vadd.f32 %v309_v48, %v291_v46 }
  0xa6   : > { %v340_v54 = vadd.f32 %v338_v52, %v337_v49 }
  0xa7   : > { %v292_v56 = vsub.f32 %v288_v45, %v290_v51  ;;  %v335_v59 = vsel %vm329_vm4, %v319_v55, 0.0 }
  0xa8   : > { %v346_v57 = vadd.f32 %v345_v50, %v340_v54 }
  0xa9   : > { %v320_v58 = vadd.f32 %v318_v53, %v292_v56 }
  0xaa   : > { %347 = vst.msk [vmem:[#allocation3] sm:$0xff] %vm262_vm0, %v346_v57 }
  0xab   : > { %v336_v61 = vsel %vm330_vm5, %v320_v58, 0.0 }
  0xac   : > { %v339_v62 = vadd.f32 %v336_v61, %v335_v59 }
  0xae   : > { %v342_v63 = vadd.f32 %v341_v60, %v339_v62 }
  0xb0   : > { %344 = vst.msk [vmem:[#allocation2] sm:$0xff] %vm262_vm0, %v342_v63 }
  0xb1   : > { %v353_v0 = vld [vmem:[#allocation3] sm:$0xff] }
  0xb2   : > { %354 = vst.msk [vmem:[%s233_s18] sm:$0xff] %vm262_vm0, %v353_v0 }
  0xb3   : > { %602 = shalt.err (!%p599_p6)
}
  0xb4   : > { %s603_s7 = scalar_lea.hbm %s814_s26, 128  ;;  %s607_s18 = scalar_lea.hbm %s894_s3, 256 }
  0xb5   : > { %p604_p7 = scmp.ne.s32.totalorder %s814_s26, %s603_s7  ;;  %p608_p11 = scmp.lt.s32.totalorder %s814_s26, %s894_s3 }
  0xb6   : > { %p609_p12 = scmp.lt.s32.totalorder %s607_s18, %s603_s7 }
  0xb7   : > { %p605_p9 = pnand %p604_p7, %p761_p4 }
  0xb8   : > { %p610_p13 = por %p609_p12, %p608_p11 }
  0xb9   : > { %p606_p10 = pneg %p605_p9 }
  0xbb   : > { %p611_p0 = pnand %p610_p13, %p606_p10 }
  0xbd   : > { %614 = shalt.err (!%p611_p0)
}
  0xbe   : > { %519 = dma.vmem_to_hbm [thread:$0]  (%p761_p4), %s816_s19, 128, %s814_s26, %s361_s29   ;;  %v351_v1 = vld [vmem:[#allocation2] sm:$0xff] }
  0xbf   : > { %s848_s5 = scalar_lea.hbm %s893_s2, %s514_s11  ;;  %352 = vst.msk [vmem:[%s818_s27] sm:$0xff] %vm262_vm0, %v351_v1  ;;  %s356_s6 = scalar_lea.sflag [#allocation5], %s801_s9 }
  0xc0   : > { %s615_s7 = scalar_lea.vmem %s375_s28, 128  ;;  %s700_s8 = smov [#allocation4]  }
  0xc1   : > { %p616_p1 = scmp.ne.s32.totalorder %s375_s28, %s615_s7  ;;  %s619_s10 = sshll.u32 %s700_s8, 4  ;;  %s620_s10 = int_to_ptr.vmem [resolvable:$false] %s619_s10 }
  0xc2   : > { %s621_s19 = scalar_lea.vmem %s620_s10, 256  ;;  %p622_p5 = scmp.lt.s32.totalorder %s375_s28, %s620_s10 }
  0xc3   : > { %p617_p2 = pnand %p616_p1, %p761_p4  ;;  %p623_p6 = scmp.lt.s32.totalorder %s621_s19, %s615_s7 }
  0xc5   : > { %p618_p3 = pneg %p617_p2  ;;  %p624_p7 = por %p623_p6, %p622_p5 }
  0xc7   : > { %p625_p9 = pnand %p624_p7, %p618_p3 }
  0xc9   : > { %628 = shalt.err (!%p625_p9)
}
  0xca   : > { %s629_s15 = scalar_lea.hbm %s848_s5, 128  ;;  %s633_s26 = scalar_lea.hbm %s893_s2, 256 }
  0xcb   : > { %p630_p10 = scmp.ne.s32.totalorder %s848_s5, %s629_s15  ;;  %p634_p13 = scmp.lt.s32.totalorder %s848_s5, %s893_s2 }
  0xcc   : > { %p635_p0 = scmp.lt.s32.totalorder %s633_s26, %s629_s15 }
  0xcd   : > { %p631_p11 = pnand %p630_p10, %p761_p4 }
  0xce   : > { %p636_p1 = por %p635_p0, %p634_p13 }
  0xcf   : > { %p632_p12 = pneg %p631_p11 }
  0xd1   : > { %p637_p2 = pnand %p636_p1, %p632_p12 }
  0xd3   : > { %640 = shalt.err (!%p637_p2)
}
  0xd4   : > { %518 = dma.vmem_to_hbm [thread:$0]  (%p761_p4), %s375_s28, 128, %s848_s5, %s356_s6  }
  0xd5 PF: > { %p529_p3 = scmp.ge.s32.totalorder %s695_s17, 2  ;;  %s399_s18 = sand.u32 1, %s675_s12  }
  0xd6   : > { %s400_s21 = scalar_lea.sflag [#allocation5], %s399_s18 }
  0xd7   : > { %p523_p5 = pnand %p529_p3, %p768_p8 }
  0xd9   : > { %p524_p6 = pneg %p523_p5 }
  0xdb   : > { %666 = dma.done.wait (%p524_p6), %s400_s21, 128  }
  0xdc   : > { %668 = vsyncadd (%p524_p6), %s400_s21, 4294967168  ;;  %s409_s23 = scalar_lea.sflag [#allocation7], %s399_s18 }
  0xdd   : > { %670 = dma.done.wait (%p524_p6), %s409_s23, 128  }
  0xde   : > { %672 = vsyncadd (%p524_p6), %s409_s23, 4294967168  ;;  %s20_s17 = sadd.s32 1, %s695_s17   ;;  %s899_s12 = smov %s679_s13 }
  0xdf   : > { %p17_p7 = scmp.ge.s32.totalorder %s20_s17, 4   ;;  %s900_s13 = smov %s683_s14 }
  0xe0   : > { %s901_s14 = smov %s774_s25  ;;  %s902_s15 = smov %s691_s16 }
  0xe1   : > { %s903_s16 = smov %s905_s20  ;;  %19 = sbr.rel (!%p17_p7) target bundleno = 6 (0x6), region = 91 }
  0xe6   :  { %414 = vsyncpa [#allocation5], 1 }
  0xe7   :  { %416 = vsyncpa [#allocation5 + $0x1], 1 }
  0xe8   :  { %417 = vsyncpa [#allocation7], 1 }
  0xe9   :  { %419 = vsyncpa [#allocation7 + $0x1], 1 }

</bundles_post_ra>
